<compile_context>
chip_gen: v5e
topology: v5e:2x2
jax: 0.10.0
libtpu: 0.0.40
codegen_flags: <defaults>
</compile_context>

<pallas_src>
import functools

import jax
import jax.numpy as jnp
from jax.experimental import pallas as pl
from jax.experimental.pallas import tpu as pltpu


_TARGET_BLOCK_BYTES = 8 * 1024 * 1024   # ~85% of HBM roofline per measured data


def _integer_power(x, n: int):
    """x ** n for a positive integer n using only VPU multiplies."""
    if n == 1:
        return x
    half = _integer_power(x, n // 2)
    out = half * half
    if n % 2:
        out = out * x
    return out


def _gem_kernel(x_ref, o_ref, *, p, eps, inv_hw, inv_p):
    """One block: (row_tile, H*W) -> clamp -> x**p -> mean -> **(1/p) -> cast."""
    x = x_ref[...]
    if not jnp.issubdtype(x.dtype, jnp.floating):
        x = x.astype(jnp.float32)
    # Clamp + p-power in the input precision: packed bf16 VPU on v6e/v7x
    # (halves VALU work / vreg pressure); f32 inputs stay f32.  This also
    # matches torch, which computes pow() in x.dtype.
    x = jnp.maximum(x, jnp.asarray(eps, dtype=x.dtype))
    p_f = float(p)
    if p_f == 1.0:
        xp = x
    elif p_f.is_integer() and p_f > 0:
        xp = _integer_power(x, int(p_f))          # VPU multiplies, no EUP
    else:
        xp = jnp.exp(jnp.log(x.astype(jnp.float32)) * jnp.float32(p_f))
    # Spatial mean accumulated in f32 regardless of input dtype.
    mean = jnp.sum(xp.astype(jnp.float32), axis=-1, keepdims=True) * jnp.float32(inv_hw)
    if p_f != 1.0:
        # Fused generalized-mean root: exp/log go to the otherwise-idle EUP
        # slot and remove a separate XLA epilogue + HBM round trip.
        mean = jnp.exp(jnp.log(mean) * jnp.float32(inv_p))
    o_ref[...] = mean.astype(o_ref.dtype)


def _vmem_capacity_bytes():
    try:
        return int(pltpu.get_tpu_info().vmem_capacity_bytes)
    except Exception:
        return 64 * 1024 * 1024     # conservative: v7x per-TC VMEM


def _plan_tiling(rows, hw, dtype):
    """Pick (row_tile, vmem_limit_bytes).

    Blocks target ~8 MiB of HBM data each; the VMEM budget accounts for
    128-lane padding, double buffering, the f32 temporaries and the
    lane-padded (row_tile, 1) output buffers.
    """
    itemsize = jnp.dtype(dtype).itemsize
    capacity = _vmem_capacity_bytes()
    # ~half of physical VMEM: 64 MiB on 128 MiB parts (v5e/v6e), 32 MiB on v7x.
    limit = min(capacity // 2, 64 * 1024 * 1024)

    sub = 8 * max(1, 4 // itemsize)               # sublane packing: 8 f32 / 16 bf16
    hw_pad = -(-hw // 128) * 128                  # lane padding in VMEM
    # Per-row VMEM bytes: 2x double-buffered input + ~1 temp in x.dtype +
    # 1 f32 temp (accumulation upcast) + 2x lane-padded (row_tile, 1) output.
    per_row = hw_pad * (3 * itemsize + 4) + 2 * 128 * itemsize

    usable = max(sub * per_row, limit - (2 << 20))
    rows_vmem = max(sub, usable // per_row)
    rows_target = max(sub, _TARGET_BLOCK_BYTES // max(1, hw * itemsize))
    cap = max(sub, (min(rows_vmem, rows_target) // sub) * sub)

    rows_sub = -(-rows // sub) * sub
    if cap >= rows_sub:
        if rows_sub >= 4 * sub:
            # Whole problem fits in one block: split into two balanced,
            # sublane-aligned steps so v7x megacore keeps both TCs busy.
            row_tile = -(-(rows_sub // 2) // sub) * sub
        else:
            row_tile = rows_sub
    else:
        row_tile = cap

    planned = row_tile * per_row + (2 << 20)
    limit = int(min(capacity, max(limit, planned)))
    return int(row_tile), limit


def gem_pallas(x, p=3.0, eps=1e-6, row_tile=None):
    """x: (N, C, H, W) -> (N, C, 1, 1), matching F.avg_pool2d-based GeM."""
    n, c, h, w = x.shape
    rows, hw = n * c, h * w
    x2d = x.reshape(rows, hw)                     # zero-copy view of contiguous NCHW

    itemsize = jnp.dtype(x.dtype).itemsize
    auto_tile, vmem_limit = _plan_tiling(rows, hw, x.dtype)
    if row_tile is None:
        row_tile = auto_tile
    grid = pl.cdiv(rows, row_tile)                # ragged last block -> masked writes

    p_f = float(p)
    kernel = functools.partial(
        _gem_kernel, p=p_f, eps=float(eps), inv_hw=1.0 / float(hw),
        inv_p=(1.0 / p_f) if p_f != 0.0 else 1.0)

    int_p = p_f.is_integer() and p_f > 0
    flops = rows * hw * ((int(p_f) + 1) if int_p else 4) + 4 * rows
    transcend = 0 if p_f == 1.0 else (2 * rows + (0 if int_p else 2 * rows * hw))
    cost = pl.CostEstimate(
        flops=int(flops),
        transcendentals=int(transcend),
        bytes_accessed=int(rows * hw * itemsize + rows * itemsize))

    # TODO(synk): remaining perf items — lane-dense (1, row_tile) output blocks
    # (needs a per-row-sum relayout through the idle XLU) and a second
    # "arbitrary" grid axis chunking H*W for very large (~>500K elem) rows.
    out2d = pl.pallas_call(
        kernel,
        out_shape=jax.ShapeDtypeStruct((rows, 1), x.dtype),
        grid_spec=pltpu.PrefetchScalarGridSpec(
            num_scalar_prefetch=0,
            grid=(grid,),
            in_specs=[pl.BlockSpec((row_tile, hw), lambda i: (i, 0))],
            out_specs=pl.BlockSpec((row_tile, 1), lambda i: (i, 0)),
        ),
        compiler_params=pltpu.CompilerParams(
            dimension_semantics=("parallel",),
            vmem_limit_bytes=vmem_limit,
        ),
        cost_estimate=cost,
    )(x2d)

    return out2d.reshape(n, c, 1, 1)


class GeM:
    """Mirror of the PyTorch module.

    p_trainable=True only changes whether p is a torch Parameter; the forward
    math is identical, so p is kept as a plain scalar here.
    """

    def __init__(self, p=3, eps=1e-6, p_trainable=False):
        self.p = float(p)
        self.eps = float(eps)

    def __call__(self, x):
        return gem_pallas(x, p=self.p, eps=self.eps)


def _gem_reference(x, p=3.0, eps=1e-6):
    xc = jnp.maximum(x, eps)
    pooled = jnp.mean(xc ** p, axis=(-2, -1), keepdims=True)
    return pooled ** (1.0 / p)


if __name__ == "__main__":
    key = jax.random.PRNGKey(0)
    x = jax.random.normal(key, (2, 4, 16, 16), dtype=jnp.float32)

    mod = GeM(p=3, eps=1e-6, p_trainable=False)
    out = mod(x)
    out = jax.block_until_ready(out)

    ref = _gem_reference(x, p=3.0, eps=1e-6)
    assert out.shape == (2, 4, 1, 1), out.shape
    assert jnp.allclose(out, ref, atol=1e-5, rtol=1e-5), (
        float(jnp.max(jnp.abs(out - ref))))

    print("KERNEL_OK")
</pallas_src>

<mosaic_0001>
module attributes {stable_mosaic.version = 11 : i64} {
  func.func @_gem_kernel(%arg0: i32, %arg1: memref<8x256xf32, #tpu.memory_space<vmem>>, %arg2: memref<8x1xf32, #tpu.memory_space<vmem>>) attributes {dimension_semantics = [#tpu.dimension_semantics<parallel>], iteration_bounds = array<i64: 1>, scalar_prefetch = 0 : i64, scratch_operands = 0 : i64, tpu.core_type = #tpu.core_type<tc>, window_params = [{transform_indices = @transform_0, window_bounds = array<i64: 8, 256>}, {transform_indices = @transform_1, window_bounds = array<i64: 8, 1>}]} {
    %c0 = arith.constant 0 : index
    %c0_0 = arith.constant 0 : index
    %0 = vector.load %arg1[%c0, %c0_0] : memref<8x256xf32, #tpu.memory_space<vmem>>, vector<8x256xf32>
    %cst = arith.constant 9.99999997E-7 : f32
    %1 = vector.broadcast %cst : f32 to vector<8x256xf32>
    %2 = arith.maximumf %0, %1 : vector<8x256xf32>
    %3 = arith.mulf %2, %2 : vector<8x256xf32>
    %4 = arith.mulf %3, %2 : vector<8x256xf32>
    %cst_1 = arith.constant dense<0.000000e+00> : vector<8xf32>
    %5 = vector.multi_reduction <add>, %4, %cst_1 [1] : vector<8x256xf32> to vector<8xf32>
    %6 = vector.shape_cast %5 : vector<8xf32> to vector<8x1xf32>
    %cst_2 = arith.constant 3.906250e-03 : f32
    %7 = vector.broadcast %cst_2 : f32 to vector<8x1xf32>
    %8 = arith.mulf %6, %7 : vector<8x1xf32>
    %9 = math.log %8 : vector<8x1xf32>
    %cst_3 = arith.constant 0.333333343 : f32
    %10 = vector.broadcast %cst_3 : f32 to vector<8x1xf32>
    %11 = arith.mulf %9, %10 : vector<8x1xf32>
    %12 = math.exp %11 : vector<8x1xf32>
    %c0_4 = arith.constant 0 : index
    %c0_5 = arith.constant 0 : index
    %13 = vector.load %arg2[%c0_4, %c0_5] : memref<8x1xf32, #tpu.memory_space<vmem>>, vector<8x1xf32>
    tpu.vector_store %arg2[%c0_4, %c0_5], %12 {strides = array<i32>} : memref<8x1xf32, #tpu.memory_space<vmem>>, vector<8x1xf32>,
    return
  }
  func.func @transform_0(%arg0: i32) -> (i32, i32) {
    %c0_i32 = arith.constant 0 : i32
    %c0_i32_0 = arith.constant 0 : i32
    return %arg0, %c0_i32 : i32, i32
  }
  func.func @transform_1(%arg0: i32) -> (i32, i32) {
    %c0_i32 = arith.constant 0 : i32
    %c0_i32_0 = arith.constant 0 : i32
    return %arg0, %c0_i32 : i32, i32
  }
}

</mosaic_0001>

<bundles_post_ra>
// kernel: tpu_custom_call.1
= control target key start
LH: loop header
LB: loop body
LE: loop exit
PB: predicated region body
PF: predicated region fallthrough
CT: control target
= control target key end

     0   :  { %6 = vsyncpa [#allocation3], 0  ;;  %s77_s9 = smov [#allocation2]   ;;  %s94_s0 = inlined_call_operand.hbm [shape: f32[8,256], index: 0, kind: input, shape index: {}]   ;;  %s95_s1 = inlined_call_operand.vmem [shape: f32[8,1], index: 1, kind: output, shape index: {}]  }
   0x1   :  { %s12_s8 = sshll.u32 %s94_s0, 4  ;;  %s14_s10 = sshll.u32 %s77_s9, 4  ;;  %s13_s8 = int_to_ptr.hbm [resolvable:$true] %s12_s8  ;;  %s15_s10 = int_to_ptr.vmem [resolvable:$true] %s14_s10 }
   0x2   :  { %17 = dma.hbm_to_vmem [thread:$0]  %s13_s8, 256, %s15_s10, [#allocation3]  }
   0x3   :  { %75 = dma.done.wait [#allocation3], 256  }
   0x4   :  { %76 = vsyncadd [#allocation3], 4294967040  ;;  %v22_v0 = vld [vmem:[#allocation2] sm:$0xff]  ;;  %v23_v1 = vld [vmem:[#allocation2 + $0x8] sm:$0xff]  ;;  %vm39_vm0 = vcmask 7168  }
   0x5   :  { %v24_v2 = vmax.f32 %v22_v0, 1e-06  ;;  %v25_v3 = vmax.f32 %v23_v1, 1e-06 }
   0x7   :  { %v26_v4 = vmul.f32 %v24_v2, %v24_v2  ;;  %v27_v5 = vmul.f32 %v25_v3, %v25_v3 }
   0x9   :  { %v28_v6 = vmul.f32 %v26_v4, %v24_v2  ;;  %v29_v7 = vmul.f32 %v27_v5, %v25_v3 }
   0xb   :  { %v30_v8 = vadd.f32 %v29_v7, %v28_v6 }
   0xd   :  { %31 = vadd.xlane.f32.xlu0 %v30_v8 }
  0x80   :  { %v32_v9 = vpop.xlane.xlu0 %31 }
  0x81   :  { %v33_v10 = vmul.f32 0.00390625, %v32_v9 }
  0x83   :  { %47 = vlog2.f32 %v33_v10 }
  0x89   :  { %v48_v11 = vpop.eup %47 }
  0x8a   :  { %v35_v12 = vmul.f32 0.6931472, %v48_v11 }
  0x8c   :  { %v36_v13 = vmul.f32 0.33333334, %v35_v12 }
  0x8e   :  { %v37_v14 = vmul.f32 1.442695, %v36_v13 }
  0x90   :  { %49 = vpow2.f32 %v37_v14 }
  0x96   :  { %v50_v15 = vpop.eup %49 }
  0x97   :  { %40 = vst.msk [vmem:[%s95_s1] sm:$0xff] %vm39_vm0, %v50_v15 }
  0x98   :  { %45 = vsyncpa [#allocation3], 1 }

</bundles_post_ra>
